<compile_context>
chip_gen: v7x
topology: tpu7x:2x2x1
jax: 0.10.0
libtpu: 0.0.40
codegen_flags: <defaults>
</compile_context>

<pallas_src>
import functools

import jax
import jax.numpy as jnp
from jax.experimental import pallas as pl
from jax.experimental.pallas import tpu as pltpu


def _bn_stats_kernel(x_ref, mean_ref, var_ref, sum_ref, sumsq_ref, *, inv_m):
    """Pass 1: streaming per-channel sum / sum-of-squares over all (N, L) tiles."""
    n = pl.program_id(0)
    l = pl.program_id(1)

    @pl.when((n == 0) & (l == 0))
    def _init():
        sum_ref[...] = jnp.zeros_like(sum_ref)
        sumsq_ref[...] = jnp.zeros_like(sumsq_ref)

    x = x_ref[0].astype(jnp.float32)                        # (C, tl)
    sum_ref[...] += jnp.sum(x, axis=-1, keepdims=True)      # cross-lane reduce (XLU)
    sumsq_ref[...] += jnp.sum(x * x, axis=-1, keepdims=True)

    @pl.when((n == pl.num_programs(0) - 1) & (l == pl.num_programs(1) - 1))
    def _finalize():
        m = sum_ref[...] * inv_m
        # Single-pass E[x^2] - mean^2; clamp >= 0 against catastrophic cancellation.
        v = jnp.maximum(sumsq_ref[...] * inv_m - m * m, 0.0)
        mean_ref[...] = m
        var_ref[...] = v


def _bn_norm_kernel(x_ref, mean_ref, var_ref, w_ref, b_ref, y_ref, *, eps):
    """Pass 2: y = (x - mean) * rsqrt(var + eps) * w + b, folded into x*scale + shift."""
    inv_std = jax.lax.rsqrt(var_ref[...] + eps)                      # (C, 1) -> EUP
    scale = w_ref[...].astype(jnp.float32) * inv_std                 # (C, 1)
    shift = b_ref[...].astype(jnp.float32) - mean_ref[...] * scale   # (C, 1)
    x = x_ref[0].astype(jnp.float32)                                 # (C, tl)
    y_ref[0] = (x * scale + shift).astype(y_ref.dtype)


def _pick_l_tile(L, C):
    """Lane-dense tile of the H*W axis: a multiple of 128 that divides L (or the
    full L when it is not 128-divisible), capped so one x tile is ~<= 2 MiB."""
    if L % 128 != 0:
        return L                                # full-extent last dim is always legal
    max_elems = 512 * 1024                      # ~2 MiB of f32 per x tile
    cap = max(128, (max_elems // max(C, 1)) // 128 * 128)
    tl = min(L, cap)
    while L % tl:                               # shrink to a 128-multiple divisor of L
        tl -= 128
    return tl


def meta_batch_norm2d(x_nchw, weight, bias, running_mean, running_var,
                      *, eps=1e-5, momentum=0.1):
    """Forward pass of MetaBatchNorm2d in training mode.

    Returns (y_nchw, new_running_mean, new_running_var).
    """
    N, C, H, W = x_nchw.shape
    L = H * W
    M = N * L

    # Free collapse of the contiguous minor dims -- no transpose, no extra HBM pass.
    x3d = x_nchw.reshape(N, C, L)
    w2d = weight.reshape(C, 1).astype(jnp.float32)
    b2d = bias.reshape(C, 1).astype(jnp.float32)

    tl = _pick_l_tile(L, C)
    num_l = L // tl
    tile_bytes = C * tl * x3d.dtype.itemsize

    def _vmem_limit(n_tile_buffers):
        need = n_tile_buffers * tile_bytes + (4 << 20)          # pipeline bufs + headroom
        return int(min(max(need, 16 << 20), 48 << 20))          # stay inside v7x 64 MiB

    x_spec = pl.BlockSpec((1, C, tl), lambda n, l: (n, 0, l))
    vec_spec = pl.BlockSpec((C, 1), lambda n, l: (0, 0))        # resident (C,1) vectors

    # ---------- Pass 1: per-channel batch statistics (streaming reduction). ----------
    bmean, bvar = pl.pallas_call(
        functools.partial(_bn_stats_kernel, inv_m=1.0 / M),
        out_shape=(jax.ShapeDtypeStruct((C, 1), jnp.float32),
                   jax.ShapeDtypeStruct((C, 1), jnp.float32)),
        grid_spec=pltpu.PrefetchScalarGridSpec(
            num_scalar_prefetch=0,
            grid=(N, num_l),
            in_specs=[x_spec],
            out_specs=[vec_spec, vec_spec],
            scratch_shapes=[pltpu.VMEM((C, 1), jnp.float32),
                            pltpu.VMEM((C, 1), jnp.float32)]),
        compiler_params=pltpu.CompilerParams(
            dimension_semantics=("arbitrary", "arbitrary"),     # global reduction
            vmem_limit_bytes=_vmem_limit(2)),
    )(x3d)

    # ---------- Pass 2: normalize + affine (independent tiles -> megacore-parallel). ----------
    y3d = pl.pallas_call(
        functools.partial(_bn_norm_kernel, eps=float(eps)),
        out_shape=jax.ShapeDtypeStruct((N, C, L), x3d.dtype),
        grid_spec=pltpu.PrefetchScalarGridSpec(
            num_scalar_prefetch=0,
            grid=(N, num_l),
            in_specs=[x_spec, vec_spec, vec_spec, vec_spec, vec_spec],
            out_specs=x_spec),
        compiler_params=pltpu.CompilerParams(
            dimension_semantics=("parallel", "parallel"),
            vmem_limit_bytes=_vmem_limit(4)),
    )(x3d, bmean, bvar, w2d, b2d)

    y_nchw = y3d.reshape(N, C, H, W)

    # Running-stat EMA update (PyTorch uses the *unbiased* batch variance here).
    bmean1 = bmean.reshape(C)
    bvar_unbiased = bvar.reshape(C) * (M / max(M - 1, 1))
    new_rm = (1.0 - momentum) * running_mean + momentum * bmean1
    new_rv = (1.0 - momentum) * running_var + momentum * bvar_unbiased
    return y_nchw, new_rm, new_rv


def _reference(x, w, b, eps):
    mean = jnp.mean(x, axis=(0, 2, 3), keepdims=True)
    var = jnp.mean((x - mean) ** 2, axis=(0, 2, 3), keepdims=True)
    return (x - mean) / jnp.sqrt(var + eps) * w.reshape(1, -1, 1, 1) + b.reshape(1, -1, 1, 1)


if __name__ == "__main__":
    key = jax.random.PRNGKey(0)
    N, C, H, W = 2, 4, 16, 16
    kx, kw, kb = jax.random.split(key, 3)

    x = jax.random.normal(kx, (N, C, H, W), dtype=jnp.float32)
    # nn.BatchNorm2d default init is weight=1, bias=0; perturb so the affine path is exercised.
    weight = jnp.ones((C,), jnp.float32) + 0.1 * jax.random.normal(kw, (C,), jnp.float32)
    bias = 0.1 * jax.random.normal(kb, (C,), jnp.float32)
    running_mean = jnp.zeros((C,), jnp.float32)
    running_var = jnp.ones((C,), jnp.float32)

    y, new_rm, new_rv = meta_batch_norm2d(
        x, weight, bias, running_mean, running_var, eps=1e-5, momentum=0.1)
    jax.block_until_ready((y, new_rm, new_rv))

    # Normalized output check.
    y_ref = _reference(x, weight, bias, 1e-5)
    assert jnp.allclose(y, y_ref, atol=1e-5, rtol=1e-5), "y mismatch vs reference"

    # Running-stat update check (momentum EMA with unbiased batch variance).
    M = N * H * W
    bmean_ref = jnp.mean(x, axis=(0, 2, 3))
    bvar_ref = jnp.var(x, axis=(0, 2, 3))
    rm_ref = 0.9 * running_mean + 0.1 * bmean_ref
    rv_ref = 0.9 * running_var + 0.1 * (bvar_ref * M / (M - 1))
    assert jnp.allclose(new_rm, rm_ref, atol=1e-5, rtol=1e-5), "running_mean mismatch"
    assert jnp.allclose(new_rv, rv_ref, atol=1e-5, rtol=1e-5), "running_var mismatch"

    print("KERNEL_OK")
</pallas_src>

<mosaic_0001>
module attributes {stable_mosaic.version = 11 : i64} {
  func.func @_bn_stats_kernel(%arg0: i32, %arg1: i32, %arg2: memref<1x4x256xf32, #tpu.memory_space<vmem>>, %arg3: memref<4x1xf32, #tpu.memory_space<vmem>>, %arg4: memref<4x1xf32, #tpu.memory_space<vmem>>, %arg5: memref<4x1xf32, #tpu.memory_space<vmem>>, %arg6: memref<4x1xf32, #tpu.memory_space<vmem>>) attributes {dimension_semantics = [#tpu.dimension_semantics<arbitrary>, #tpu.dimension_semantics<arbitrary>], iteration_bounds = array<i64: 2, 1>, scalar_prefetch = 0 : i64, scratch_operands = 2 : i64, tpu.core_type = #tpu.core_type<tc>, window_params = [{transform_indices = @transform_0, window_bounds = array<i64: 1, 4, 256>}, {pipeline_mode = #tpu.pipeline_mode<synchronous>, transform_indices = @transform_1, window_bounds = array<i64: 4, 1>}, {pipeline_mode = #tpu.pipeline_mode<synchronous>, transform_indices = @transform_2, window_bounds = array<i64: 4, 1>}]} {
    %c0_i32 = arith.constant 0 : i32
    %0 = arith.cmpi eq, %arg0, %c0_i32 : i32
    %c0_i32_0 = arith.constant 0 : i32
    %1 = arith.cmpi eq, %arg1, %c0_i32_0 : i32
    %2 = arith.andi %0, %1 : i1
    %3 = arith.extui %2 : i1 to i32
    %c0_i32_1 = arith.constant 0 : i32
    %4 = arith.cmpi ne, %3, %c0_i32_1 : i32
    scf.if %4 {
      %cst_15 = arith.constant 0.000000e+00 : f32
      %23 = vector.broadcast %cst_15 : f32 to vector<4x1xf32>
      %c0_16 = arith.constant 0 : index
      %c0_17 = arith.constant 0 : index
      %24 = vector.load %arg5[%c0_16, %c0_17] : memref<4x1xf32, #tpu.memory_space<vmem>>, vector<4x1xf32>
      tpu.vector_store %arg5[%c0_16, %c0_17], %23 {strides = array<i32>} : memref<4x1xf32, #tpu.memory_space<vmem>>, vector<4x1xf32>,
      %cst_18 = arith.constant 0.000000e+00 : f32
      %25 = vector.broadcast %cst_18 : f32 to vector<4x1xf32>
      %c0_19 = arith.constant 0 : index
      %c0_20 = arith.constant 0 : index
      %26 = vector.load %arg6[%c0_19, %c0_20] : memref<4x1xf32, #tpu.memory_space<vmem>>, vector<4x1xf32>
      tpu.vector_store %arg6[%c0_19, %c0_20], %25 {strides = array<i32>} : memref<4x1xf32, #tpu.memory_space<vmem>>, vector<4x1xf32>,
    } else {
    }
    %c0 = arith.constant 0 : index
    %c0_2 = arith.constant 0 : index
    %c0_3 = arith.constant 0 : index
    %5 = vector.load %arg2[%c0, %c0_2, %c0_3] : memref<1x4x256xf32, #tpu.memory_space<vmem>>, vector<1x4x256xf32>
    %6 = vector.shape_cast %5 : vector<1x4x256xf32> to vector<4x256xf32>
    %c0_4 = arith.constant 0 : index
    %c0_5 = arith.constant 0 : index
    %7 = vector.load %arg5[%c0_4, %c0_5] : memref<4x1xf32, #tpu.memory_space<vmem>>, vector<4x1xf32>
    %cst = arith.constant dense<0.000000e+00> : vector<4xf32>
    %8 = vector.multi_reduction <add>, %6, %cst [1] : vector<4x256xf32> to vector<4xf32>
    %9 = vector.shape_cast %8 : vector<4xf32> to vector<4x1xf32>
    %10 = arith.addf %7, %9 : vector<4x1xf32>
    %c0_6 = arith.constant 0 : index
    %c0_7 = arith.constant 0 : index
    %11 = vector.load %arg5[%c0_6, %c0_7] : memref<4x1xf32, #tpu.memory_space<vmem>>, vector<4x1xf32>
    tpu.vector_store %arg5[%c0_6, %c0_7], %10 {strides = array<i32>} : memref<4x1xf32, #tpu.memory_space<vmem>>, vector<4x1xf32>,
    %c0_8 = arith.constant 0 : index
    %c0_9 = arith.constant 0 : index
    %12 = vector.load %arg6[%c0_8, %c0_9] : memref<4x1xf32, #tpu.memory_space<vmem>>, vector<4x1xf32>
    %13 = arith.mulf %6, %6 : vector<4x256xf32>
    %cst_10 = arith.constant dense<0.000000e+00> : vector<4xf32>
    %14 = vector.multi_reduction <add>, %13, %cst_10 [1] : vector<4x256xf32> to vector<4xf32>
    %15 = vector.shape_cast %14 : vector<4xf32> to vector<4x1xf32>
    %16 = arith.addf %12, %15 : vector<4x1xf32>
    %c0_11 = arith.constant 0 : index
    %c0_12 = arith.constant 0 : index
    %17 = vector.load %arg6[%c0_11, %c0_12] : memref<4x1xf32, #tpu.memory_space<vmem>>, vector<4x1xf32>
    tpu.vector_store %arg6[%c0_11, %c0_12], %16 {strides = array<i32>} : memref<4x1xf32, #tpu.memory_space<vmem>>, vector<4x1xf32>,
    %c1_i32 = arith.constant 1 : i32
    %18 = arith.cmpi eq, %arg0, %c1_i32 : i32
    %c0_i32_13 = arith.constant 0 : i32
    %19 = arith.cmpi eq, %arg1, %c0_i32_13 : i32
    %20 = arith.andi %18, %19 : i1
    %21 = arith.extui %20 : i1 to i32
    %c0_i32_14 = arith.constant 0 : i32
    %22 = arith.cmpi ne, %21, %c0_i32_14 : i32
    scf.if %22 {
      %c0_15 = arith.constant 0 : index
      %c0_16 = arith.constant 0 : index
      %23 = vector.load %arg5[%c0_15, %c0_16] : memref<4x1xf32, #tpu.memory_space<vmem>>, vector<4x1xf32>
      %cst_17 = arith.constant 0.001953125 : f32
      %24 = vector.broadcast %cst_17 : f32 to vector<4x1xf32>
      %25 = arith.mulf %23, %24 : vector<4x1xf32>
      %c0_18 = arith.constant 0 : index
      %c0_19 = arith.constant 0 : index
      %26 = vector.load %arg6[%c0_18, %c0_19] : memref<4x1xf32, #tpu.memory_space<vmem>>, vector<4x1xf32>
      %cst_20 = arith.constant 0.001953125 : f32
      %27 = vector.broadcast %cst_20 : f32 to vector<4x1xf32>
      %28 = arith.mulf %26, %27 : vector<4x1xf32>
      %29 = arith.mulf %25, %25 : vector<4x1xf32>
      %30 = arith.subf %28, %29 : vector<4x1xf32>
      %cst_21 = arith.constant 0.000000e+00 : f32
      %31 = vector.broadcast %cst_21 : f32 to vector<4x1xf32>
      %32 = arith.maximumf %30, %31 : vector<4x1xf32>
      %c0_22 = arith.constant 0 : index
      %c0_23 = arith.constant 0 : index
      %33 = vector.load %arg3[%c0_22, %c0_23] : memref<4x1xf32, #tpu.memory_space<vmem>>, vector<4x1xf32>
      tpu.vector_store %arg3[%c0_22, %c0_23], %25 {strides = array<i32>} : memref<4x1xf32, #tpu.memory_space<vmem>>, vector<4x1xf32>,
      %c0_24 = arith.constant 0 : index
      %c0_25 = arith.constant 0 : index
      %34 = vector.load %arg4[%c0_24, %c0_25] : memref<4x1xf32, #tpu.memory_space<vmem>>, vector<4x1xf32>
      tpu.vector_store %arg4[%c0_24, %c0_25], %32 {strides = array<i32>} : memref<4x1xf32, #tpu.memory_space<vmem>>, vector<4x1xf32>,
    } else {
    }
    return
  }
  func.func @transform_0(%arg0: i32, %arg1: i32) -> (i32, i32, i32) {
    %c0_i32 = arith.constant 0 : i32
    %c0_i32_0 = arith.constant 0 : i32
    return %arg0, %c0_i32, %arg1 : i32, i32, i32
  }
  func.func @transform_1(%arg0: i32, %arg1: i32) -> (i32, i32) {
    %c0_i32 = arith.constant 0 : i32
    %c0_i32_0 = arith.constant 0 : i32
    %c0_i32_1 = arith.constant 0 : i32
    return %c0_i32, %c0_i32_0 : i32, i32
  }
  func.func @transform_2(%arg0: i32, %arg1: i32) -> (i32, i32) {
    %c0_i32 = arith.constant 0 : i32
    %c0_i32_0 = arith.constant 0 : i32
    %c0_i32_1 = arith.constant 0 : i32
    return %c0_i32, %c0_i32_0 : i32, i32
  }
}

</mosaic_0001>

<bundles_post_ra>
// kernel: tpu_custom_call.1
= control target key start
LH: loop header
LB: loop body
LE: loop exit
PB: predicated region body
PF: predicated region fallthrough
CT: control target
= control target key end

     0   :  { %8 = vsyncpa [#allocation5], 0  ;;  %s571_s0 = inlined_call_operand.hbm [shape: f32[2,4,256], index: 0, kind: input, shape index: {}]   ;;  %s572_s1 = inlined_call_operand.vmem [shape: f32[4,1], index: 1, kind: output, shape index: {0}]   ;;  %s573_s2 = inlined_call_operand.vmem [shape: f32[4,1], index: 2, kind: output, shape index: {1}]  }
   0x1   :  { %10 = vsyncpa [#allocation5 + $0x1], 0  ;;  %s439_s9 = smov 0   ;;  %s441_s10 = smov 0  }
   0x2   :  { %s443_s11 = smov 0   ;;  %s445_s12 = smov 0  }
   0x3   :  { %s447_s13 = smov 0   ;;  %s449_s14 = smov 0  }
   0x4 LB: > { %s268_s15 = sadd.s32 4294967295, %s420_s14   ;;  %s28_s16 = sadd.s32 1, %s416_s13  ;;  %s420_s14 = sphi %s449_s14, %s16_s14   ;;  %s416_s13 = sphi %s447_s13, %s583_s13   ;;  %s412_s12 = sphi %s445_s12, %s582_s12   ;;  %s408_s11 = sphi %s443_s11, %s581_s11   ;;  %s404_s10 = sphi %s441_s10, %s580_s10   ;;  %s400_s9 = sphi %s439_s9, %s579_s9  }
   0x5   : > { %p30_p0 = scmp.ge.s32.totalorder %s28_s16, 2  ;;  %s37_s17 = sadd.s32 1, %s408_s11 }
   0x6   : > { %p44_p1 = scmp.ne.s32.totalorder %s408_s11, %s404_s10  ;;  %p45_p2 = scmp.eq.s32.totalorder %s420_s14, 0 }
   0x7   : > { %s585_s16 = smov (%p30_p0, %s28_s16), 0  ;;  %p50_p4 = scmp.ne.s32.totalorder %s404_s10, %s400_s9 }
   0x8   : > { %p475_p3 = por %p45_p2, %p44_p1  ;;  %s32_s19 = ssub.s32 %s416_s13, %s585_s16 }
   0x9   : > { %p51_p5 = scmp.eq.s32.totalorder %s268_s15, 0  ;;  %p35_p6 = scmp.eq.s32.totalorder %s32_s19, 0 }
   0xa   : > { %p289_p8 = scmp.lt.s32.totalorder %s420_s14, 2  ;;  %s116_s22 = sand.u32 1, %s408_s11  }
   0xb   : > { %p482_p7 = por %p51_p5, %p50_p4  ;;  %s280_s23 = sshll.u32 %s416_s13, 7 }
   0xc   : > { %s488_s21 = scalar_select %p35_p6, %s408_s11, %s37_s17  }
   0xd   : > { %s271_s24 = sshll.u32 %s116_s22, 3  ;;  %s495_s27 = scalar_lea.hbm %s571_s0, %s280_s23 }
   0xe   : > { %s120_s28 = scalar_lea.vmem [#allocation4], %s271_s24  ;;  %p499_p9 = pnand %p289_p8, %p475_p3 }
   0xf   : > { %s130_s29 = sshll.u32 %s120_s28, 4  ;;  %s117_s3 = scalar_lea.sflag [#allocation5], %s116_s22  ;;  %s503_s29 = int_to_ptr.vmem [resolvable:$true] %s130_s29 }
  0x10   : > { %s340_s4 = scalar_lea.hbm %s495_s27, 128  ;;  %p342_p13 = pneg %p499_p9 }
  0x11   : > { %p341_p12 = scmp.ne.s32.totalorder %s495_s27, %s340_s4  ;;  %s345_s7 = scalar_lea.hbm %s571_s0, 256 }
  0x12   : > { %p346_p2 = scmp.lt.u32.totalorder %s495_s27, %s571_s0  ;;  %p347_p3 = scmp.lt.u32.totalorder %s345_s7, %s340_s4 }
  0x13   : > { %p343_p0 = pnand %p342_p13, %p341_p12  ;;  %p349_p5 = scmp.lt.u32.totalorder %s340_s4, %s495_s27 }
  0x14   : > { %p348_p4 = por %p347_p3, %p346_p2 }
  0x15   : > { %p344_p1 = pneg %p343_p0 }
  0x16   : > { %p350_p6 = por %p349_p5, %p348_p4 }
  0x18   : > { %p351_p8 = pnand %p350_p6, %p344_p1 }
  0x1a   : > { %354 = shalt.err (!%p351_p8)
}
  0x1b   : > { %s355_s15 = scalar_lea.vmem %s503_s29, 128  ;;  %s422_s17 = smov [#allocation4]  }
  0x1c   : > { %p356_p12 = scmp.ne.s32.totalorder %s503_s29, %s355_s15  ;;  %s360_s18 = sshll.u32 %s422_s17, 4  ;;  %s361_s18 = int_to_ptr.vmem [resolvable:$false] %s360_s18 }
  0x1d   : > { %s362_s19 = scalar_lea.vmem %s361_s18, 256  ;;  %p363_p11 = scmp.lt.s32.totalorder %s503_s29, %s361_s18 }
  0x1e   : > { %p358_p0 = pnand %p356_p12, %p342_p13  ;;  %p364_p2 = scmp.lt.s32.totalorder %s362_s19, %s355_s15 }
  0x20   : > { %p359_p10 = pneg %p358_p0  ;;  %p365_p3 = por %p364_p2, %p363_p11 }
  0x22   : > { %p366_p4 = pnand %p365_p3, %p359_p10 }
  0x24   : > { %369 = shalt.err (!%p366_p4)
}
  0x25   : > { %288 = dma.hbm_to_vmem [thread:$0]  (!%p499_p9), %s495_s27, 128, %s503_s29, %s117_s3  }
  0x26   : > { %p577_p1 = scmp.lt.s32.totalorder %s420_s14, 3  ;;  %p578_p5 = scmp.ge.s32.totalorder %s420_s14, 1 }
  0x28   : > { %p136_p13 = pnand %p578_p5, %p577_p1 }
  0x29   : > { %s141_s22 = sand.u32 (!%p136_p13), 1, %s404_s10  }
  0x2a   : > { %139 = sbr.rel (%p136_p13) target bundleno = 228 (0xe4), region = 24  ;;  %s275_s23 = sshll.u32 (!%p136_p13), %s141_s22, 3 }
  0x2b   : > { %s142_s24 = scalar_lea.sflag (!%p136_p13), [#allocation5], %s141_s22  ;;  %s145_s25 = scalar_lea.vmem (!%p136_p13), [#allocation4], %s275_s23 }
  0x31   : > { %395 = dma.done.wait (%p482_p7), %s142_s24, 128  }
  0x32   : > { %397 = vsyncadd (%p482_p7), %s142_s24, 4294967168  ;;  %p162_p10 = scmp.eq.s32.totalorder %s412_s12, 0 }
  0x33   : > { %vm168_vm0 = vcmask (%p162_p10), 3072   ;;  %v423_v0 = vmov (%p162_p10), 0.0  }
  0x34   : > { %167 = sbr.rel (!%p162_p10) target bundleno = 59 (0x3b), region = 32  ;;  %169 = vst.msk [vmem:[#allocation2] sm:$0xf] (%p162_p10), %vm168_vm0, %v423_v0  ;;  %170 = vst.msk [vmem:[#allocation3] sm:$0xf] (%p162_p10), %vm168_vm0, %v423_v0 }
  0x3b PF: > { %v171_v1 = vld [vmem:[%s145_s25] sm:$0xff]  ;;  %vm176_vm1 = vcmask 1043456   ;;  %p197_p7 = scmp.eq.s32.totalorder %s412_s12, 1  ;;  %v172_v11 = vld [vmem:[#allocation2] sm:$0xf]  ;;  %vm183_vm2 = vcmask 3072  }
  0x3c   : > { %v174_v2 = vcombine.high %v171_v1, %v171_v1  ;;  %v177_v3 = vsel %vm176_vm1, %v171_v1, 0.0  ;;  %v186_v4 = vmul.f32 %v171_v1, %v171_v1  ;;  %v185_v14 = vld [vmem:[#allocation3] sm:$0xf] }
  0x3e   : > { %v178_v5 = vsel %vm176_vm1, %v174_v2, 0.0  ;;  %v188_v6 = vcombine.high %v186_v4, %v186_v4  ;;  %v190_v7 = vsel %vm176_vm1, %v186_v4, 0.0 }
  0x3f   : > { %v179_v8 = vadd.f32 %v178_v5, %v177_v3 }
  0x40   : > { %v191_v9 = vsel %vm176_vm1, %v188_v6, 0.0 }
  0x41   : > { %180 = vadd.xlane.f32.xlu0 %v179_v8  ;;  %v192_v10 = vadd.f32 %v191_v9, %v190_v7 }
  0x45   : > { %193 = vadd.xlane.f32.xlu0 %v192_v10 }
  0xce   : > { %v181_v12 = vpop.xlane.xlu0 %180 }
  0xcf   : > { %v182_v13 = vadd.f32 %v181_v12, %v172_v11  ;;  %201 = sbr.rel (!%p197_p7) target bundleno = 228 (0xe4), region = 36 }
  0xd1   : > { %184 = vst.msk [vmem:[#allocation2] sm:$0xf] %vm183_vm2, %v182_v13 }
  0xd2   : > { %v194_v15 = vpop.xlane.xlu0 %193 }
  0xd3   : > { %v195_v16 = vadd.f32 %v194_v15, %v185_v14 }
  0xd5   : > { %196 = vst.msk [vmem:[#allocation3] sm:$0xf] %vm183_vm2, %v195_v16 }
  0xd8   : > { %v202_v17 = vld [vmem:[#allocation2] sm:$0xf] }
  0xd9   : > { %v203_v19 = vmul.f32 0.001953125, %v202_v17 }
  0xdb   : > { %209 = vst.msk [vmem:[%s572_s1] sm:$0xf] %vm183_vm2, %v203_v19  ;;  %v206_v21 = vmul.f32 %v203_v19, %v203_v19 }
  0xdc   : > { %v204_v18 = vld [vmem:[#allocation3] sm:$0xf] }
  0xdd   : > { %v205_v20 = vmul.f32 0.001953125, %v204_v18 }
  0xdf   : > { %v207_v22 = vsub.f32 %v205_v20, %v206_v21 }
  0xe1   : > { %v208_v23 = vmax.f32 %v207_v22, 0.0 }
  0xe3   : > { %210 = vst.msk [vmem:[%s573_s2] sm:$0xf] %vm183_vm2, %v208_v23 }
  0xe4 PF: > { %s16_s14 = sadd.s32 1, %s420_s14   ;;  %s579_s9 = smov %s404_s10 }
  0xe5   : > { %p13_p9 = scmp.ge.s32.totalorder %s16_s14, 4   ;;  %s580_s10 = smov %s408_s11 }
  0xe6   : > { %s581_s11 = smov %s488_s21  ;;  %s582_s12 = smov %s416_s13 }
  0xe7   : > { %s583_s13 = smov %s585_s16  ;;  %15 = sbr.rel (!%p13_p9) target bundleno = 4 (0x4), region = 76 }
  0xee   :  { %228 = vsyncpa [#allocation5], 1 }
  0xef   :  { %230 = vsyncpa [#allocation5 + $0x1], 1 }

</bundles_post_ra>
